<compile_context>
chip_gen: v5e
topology: v5e:2x2
jax: 0.10.0
libtpu: 0.0.40
codegen_flags: <defaults>
</compile_context>

<pallas_src>
import functools

import jax
import jax.numpy as jnp
from jax.experimental import pallas as pl
from jax.experimental.pallas import tpu as pltpu

# Module hyper-parameters (defaults of Affine_Transform.__init__) — no learned weights.
SCALE_LIMIT = 0.05
SHEAR_LIMIT = 0.1
ROTATION_LIMIT = 0.1
TRANS_LIMIT = 0.15
ADJ_MASK_PARA = 0.0
# NOTE: the PyTorch module reads `self.embedding_size`, which __init__ never sets
# (latent bug).  We pin it to the number of consumed affine columns (6), so the
# mask-intensity path reads column 6 of `out`.
EMBEDDING_SIZE = 6

_LANE = 128
_MAX_BLOCK_B = 64 * 1024  # 2 MiB f32 per (8, block_b) tile -> fits all generations easily


def _round_up(v, m):
    return -(-v // m) * m


def _affine_kernel(cols_ref, packed_ref, *, has_rotate_value: bool):
    """Lane-dense affine-parameter kernel.

    cols_ref:   [8, TB]  rows 0..5 = affine columns of `out`, row 6 = mask column,
                         row 7 = rotate_value (or zeros when absent).
    packed_ref: [8, TB]  rows = (s1, s2, cos, sh1, t1, t2, mask, sin).
    """
    x = cols_ref[...].astype(jnp.float32)        # [8, TB]

    # One EUP push covers every tanh the module needs (all 8 sublanes at once).
    th = jnp.tanh(x)

    s1 = SCALE_LIMIT * th[0:1, :] + 1.0
    s2 = SCALE_LIMIT * th[1:2, :] + 1.0
    sh1 = SHEAR_LIMIT * th[3:4, :]               # Symmetric=True -> shear_2 == shear_1
    t1 = TRANS_LIMIT * th[4:5, :]
    t2 = TRANS_LIMIT * th[5:6, :]
    mask = ADJ_MASK_PARA * th[6:7, :] + 1.0      # keeps NaN propagation of the original

    if has_rotate_value:
        rotate = x[7:8, :] + ROTATION_LIMIT * th[2:3, :]
    else:
        rotate = jnp.maximum(x[2:3, :], 0.0)     # nn.ReLU()

    c = jnp.cos(rotate)
    s = jnp.sin(rotate)

    # Compact packed output: 8 f32 per batch row, stored lane-dense.
    packed_ref[...] = jnp.concatenate([s1, s2, c, sh1, t1, t2, mask, s], axis=0)


def affine_transform(out, rotate_value=None):
    """Pallas equivalent of Affine_Transform(device).forward(out, rotate_value)."""
    B, E = out.shape
    assert E >= EMBEDDING_SIZE + 1, "embedding must have >= 7 columns"

    has_rv = rotate_value is not None
    if has_rv:
        slab_dtype = jnp.promote_types(out.dtype, jnp.asarray(rotate_value).dtype)
        rv_col = jnp.reshape(rotate_value, (B, 1)).astype(slab_dtype)
    else:
        slab_dtype = out.dtype
        rv_col = jnp.zeros((B, 1), slab_dtype)

    # Pre-slice to the 7 used columns (+ rotate_value) and transpose -> lane-dense [8, B].
    slab = jnp.concatenate([out[:, :7].astype(slab_dtype), rv_col], axis=1).T  # [8, B]

    block_b = min(_round_up(B, _LANE), _MAX_BLOCK_B)
    b_pad = _round_up(B, block_b)
    if b_pad != B:
        slab = jnp.pad(slab, ((0, 0), (0, b_pad - B)))  # zero pad -> no NaNs in dead lanes

    kernel = functools.partial(_affine_kernel, has_rotate_value=has_rv)
    packed = pl.pallas_call(
        kernel,
        grid=(b_pad // block_b,),
        in_specs=[pl.BlockSpec((8, block_b), lambda i: (0, i))],
        out_specs=pl.BlockSpec((8, block_b), lambda i: (0, i)),
        out_shape=jax.ShapeDtypeStruct((8, b_pad), jnp.float32),
        compiler_params=pltpu.CompilerParams(dimension_semantics=("parallel",)),
    )(slab)

    # Cheap XLA scatter of the 8 packed scalars into the constant-structured matrices.
    packed = packed[:, :B]
    s1, s2, c, sh1, t1, t2, mask, s = (packed[i] for i in range(8))
    zeros = jnp.zeros((B,), jnp.float32)
    ones = jnp.ones((B,), jnp.float32)

    scale = jnp.stack([s1, zeros, zeros, zeros, s2, zeros], axis=1).reshape(B, 2, 3)
    shear = jnp.stack([ones, sh1, zeros, sh1, ones, zeros], axis=1).reshape(B, 2, 3)
    rotation = jnp.stack([c, -s, zeros, s, c, zeros], axis=1).reshape(B, 2, 3)
    translation = jnp.stack([ones, zeros, t1, zeros, ones, t2], axis=1).reshape(B, 2, 3)
    mask_parameter = mask[:, None]
    return scale, shear, rotation, translation, mask_parameter


def _reference(out, rotate_value=None):
    """Pure-JAX transcription of the PyTorch forward (default flags)."""
    out = out.astype(jnp.float32)
    B = out.shape[0]
    s1 = SCALE_LIMIT * jnp.tanh(out[:, 0]) + 1.0
    s2 = SCALE_LIMIT * jnp.tanh(out[:, 1]) + 1.0
    if rotate_value is not None:
        rotate = jnp.reshape(rotate_value, (B,)).astype(jnp.float32) \
            + ROTATION_LIMIT * jnp.tanh(out[:, 2])
    else:
        rotate = jax.nn.relu(out[:, 2])
    sh1 = SHEAR_LIMIT * jnp.tanh(out[:, 3])
    sh2 = sh1
    t1 = TRANS_LIMIT * jnp.tanh(out[:, 4])
    t2 = TRANS_LIMIT * jnp.tanh(out[:, 5])
    mask = ADJ_MASK_PARA * jnp.tanh(out[:, EMBEDDING_SIZE:EMBEDDING_SIZE + 1]) + 1.0
    a4 = jnp.ones((B,), jnp.float32)
    a5 = jnp.zeros((B,), jnp.float32)
    a1, a2 = jnp.cos(rotate), jnp.sin(rotate)
    rot = jnp.stack([jnp.stack([a1, a2], 1), jnp.stack([-a2, a1], 1), jnp.stack([a5, a5], 1)], 2)
    scl = jnp.stack([jnp.stack([s1, a5], 1), jnp.stack([a5, s2], 1), jnp.stack([a5, a5], 1)], 2)
    shr = jnp.stack([jnp.stack([a4, sh1], 1), jnp.stack([sh2, a4], 1), jnp.stack([a5, a5], 1)], 2)
    trn = jnp.stack([jnp.stack([a4, a5], 1), jnp.stack([a5, a4], 1), jnp.stack([t1, t2], 1)], 2)
    return scl, shr, rot, trn, mask


if __name__ == "__main__":
    key = jax.random.PRNGKey(0)
    k1, k2 = jax.random.split(key)
    B, E = 2, 8  # columns 0..5 drive the affine params, column 6 the mask intensity
    out = jax.random.normal(k1, (B, E), dtype=jnp.float32)
    rv = jax.random.normal(k2, (B,), dtype=jnp.float32)

    names = ("scale", "shear", "rotation", "translation", "mask_parameter")
    for rotate_value in (None, rv):  # exercise both forward paths
        got = affine_transform(out, rotate_value)
        got = jax.tree_util.tree_map(jax.block_until_ready, got)
        want = _reference(out, rotate_value)
        for name, g, w in zip(names, got, want):
            assert g.shape == w.shape, (name, g.shape, w.shape)
            assert jnp.allclose(g, w, atol=1e-5, rtol=1e-5), name

    print("KERNEL_OK")
</pallas_src>

<mosaic_0001>
module attributes {stable_mosaic.version = 11 : i64} {
  func.func @_affine_kernel(%arg0: i32, %arg1: memref<8x128xf32, #tpu.memory_space<vmem>>, %arg2: memref<8x128xf32, #tpu.memory_space<vmem>>) attributes {dimension_semantics = [#tpu.dimension_semantics<parallel>], iteration_bounds = array<i64: 1>, scalar_prefetch = 0 : i64, scratch_operands = 0 : i64, tpu.core_type = #tpu.core_type<tc>, window_params = [{transform_indices = @transform_0, window_bounds = array<i64: 8, 128>}, {transform_indices = @transform_1, window_bounds = array<i64: 8, 128>}]} {
    %c0 = arith.constant 0 : index
    %c0_0 = arith.constant 0 : index
    %0 = vector.load %arg1[%c0, %c0_0] : memref<8x128xf32, #tpu.memory_space<vmem>>, vector<8x128xf32>
    %1 = math.tanh %0 : vector<8x128xf32>
    %2 = vector.extract_strided_slice %1 {offsets = [0, 0], sizes = [1, 128], strides = [1, 1]} : vector<8x128xf32> to vector<1x128xf32>
    %cst = arith.constant 5.000000e-02 : f32
    %3 = vector.broadcast %cst : f32 to vector<1x128xf32>
    %4 = arith.mulf %3, %2 : vector<1x128xf32>
    %cst_1 = arith.constant 1.000000e+00 : f32
    %5 = vector.broadcast %cst_1 : f32 to vector<1x128xf32>
    %6 = arith.addf %4, %5 : vector<1x128xf32>
    %7 = vector.extract_strided_slice %1 {offsets = [1, 0], sizes = [1, 128], strides = [1, 1]} : vector<8x128xf32> to vector<1x128xf32>
    %cst_2 = arith.constant 5.000000e-02 : f32
    %8 = vector.broadcast %cst_2 : f32 to vector<1x128xf32>
    %9 = arith.mulf %8, %7 : vector<1x128xf32>
    %cst_3 = arith.constant 1.000000e+00 : f32
    %10 = vector.broadcast %cst_3 : f32 to vector<1x128xf32>
    %11 = arith.addf %9, %10 : vector<1x128xf32>
    %12 = vector.extract_strided_slice %1 {offsets = [3, 0], sizes = [1, 128], strides = [1, 1]} : vector<8x128xf32> to vector<1x128xf32>
    %cst_4 = arith.constant 1.000000e-01 : f32
    %13 = vector.broadcast %cst_4 : f32 to vector<1x128xf32>
    %14 = arith.mulf %13, %12 : vector<1x128xf32>
    %15 = vector.extract_strided_slice %1 {offsets = [4, 0], sizes = [1, 128], strides = [1, 1]} : vector<8x128xf32> to vector<1x128xf32>
    %cst_5 = arith.constant 1.500000e-01 : f32
    %16 = vector.broadcast %cst_5 : f32 to vector<1x128xf32>
    %17 = arith.mulf %16, %15 : vector<1x128xf32>
    %18 = vector.extract_strided_slice %1 {offsets = [5, 0], sizes = [1, 128], strides = [1, 1]} : vector<8x128xf32> to vector<1x128xf32>
    %cst_6 = arith.constant 1.500000e-01 : f32
    %19 = vector.broadcast %cst_6 : f32 to vector<1x128xf32>
    %20 = arith.mulf %19, %18 : vector<1x128xf32>
    %21 = vector.extract_strided_slice %1 {offsets = [6, 0], sizes = [1, 128], strides = [1, 1]} : vector<8x128xf32> to vector<1x128xf32>
    %cst_7 = arith.constant 0.000000e+00 : f32
    %22 = vector.broadcast %cst_7 : f32 to vector<1x128xf32>
    %23 = arith.mulf %22, %21 : vector<1x128xf32>
    %cst_8 = arith.constant 1.000000e+00 : f32
    %24 = vector.broadcast %cst_8 : f32 to vector<1x128xf32>
    %25 = arith.addf %23, %24 : vector<1x128xf32>
    %26 = vector.extract_strided_slice %0 {offsets = [2, 0], sizes = [1, 128], strides = [1, 1]} : vector<8x128xf32> to vector<1x128xf32>
    %cst_9 = arith.constant 0.000000e+00 : f32
    %27 = vector.broadcast %cst_9 : f32 to vector<1x128xf32>
    %28 = arith.maximumf %26, %27 : vector<1x128xf32>
    %29 = math.cos %28 : vector<1x128xf32>
    %30 = math.sin %28 : vector<1x128xf32>
    %31 = tpu.concatenate %6, %11, %29, %14, %17, %20, %25, %30 in 0 : vector<1x128xf32>, vector<1x128xf32>, vector<1x128xf32>, vector<1x128xf32>, vector<1x128xf32>, vector<1x128xf32>, vector<1x128xf32>, vector<1x128xf32> -> vector<8x128xf32>
    %c0_10 = arith.constant 0 : index
    %c0_11 = arith.constant 0 : index
    %32 = vector.load %arg2[%c0_10, %c0_11] : memref<8x128xf32, #tpu.memory_space<vmem>>, vector<8x128xf32>
    tpu.vector_store %arg2[%c0_10, %c0_11], %31 {strides = array<i32>} : memref<8x128xf32, #tpu.memory_space<vmem>>, vector<8x128xf32>,
    return
  }
  func.func @transform_0(%arg0: i32) -> (i32, i32) {
    %c0_i32 = arith.constant 0 : i32
    %c0_i32_0 = arith.constant 0 : i32
    return %c0_i32, %arg0 : i32, i32
  }
  func.func @transform_1(%arg0: i32) -> (i32, i32) {
    %c0_i32 = arith.constant 0 : i32
    %c0_i32_0 = arith.constant 0 : i32
    return %c0_i32, %arg0 : i32, i32
  }
}

</mosaic_0001>

<bundles_post_ra>
// kernel: tpu_custom_call.1
= control target key start
LH: loop header
LB: loop body
LE: loop exit
PB: predicated region body
PF: predicated region fallthrough
CT: control target
= control target key end

     0   :  { %6 = vsyncpa [#allocation3], 0  ;;  %s518_s0 = inlined_call_operand.hbm [shape: f32[8,128], index: 0, kind: input, shape index: {}]   ;;  %s519_s1 = inlined_call_operand.hbm [shape: f32[8,128], index: 1, kind: output, shape index: {}]  }
   0x1   :  { %7 = vsyncpa [#allocation4], 0  ;;  %s13_s8 = sshll.u32 %s518_s0, 4  ;;  %s443_s9 = smov [#allocation2]   ;;  %s14_s8 = int_to_ptr.hbm [resolvable:$true] %s13_s8 }
   0x2   :  { %s15_s10 = sshll.u32 %s443_s9, 4  ;;  %s16_s10 = int_to_ptr.vmem [resolvable:$true] %s15_s10 }
   0x3   :  { %18 = dma.hbm_to_vmem [thread:$0]  %s14_s8, 128, %s16_s10, [#allocation3]  }
   0x4   :  { %439 = dma.done.wait [#allocation3], 128  }
   0x5   :  { %440 = vsyncadd [#allocation3], 4294967168  ;;  %v465_v0 = vld [vmem:[#allocation2] sm:$0xff]  ;;  %v444_v13 = vmov 683565275   ;;  %s451_s0 = smov [#allocation5]  }
   0x6   :  { %v468_v1 = vmax.f32 %v465_v0, 0.0  ;;  %v445_v15 = vmov 2475754826   ;;  %v446_v17 = vmov 2131351028   ;;  %389 = vtanh.f32 %v465_v0  ;;  %s362_s11 = sshll.u32 %s451_s0, 4  ;;  %s363_s11 = int_to_ptr.vmem [resolvable:$true] %s362_s11 }
   0x7   :  { %v447_v19 = vmov 2102212464   ;;  %v448_v21 = vmov 920167782   ;;  %v449_v27 = vmov 1326507024  }
   0x8   :  { %v35_v2 = vand.u32 2139095040, %v468_v1  ;;  %v32_v4 = vand.u32 2147483647, %v468_v1  ;;  %vm34_vm12 = vcmp.lt.s32.totalorder %v468_v1, 0  ;;  %s364_s14 = sshll.u32 %s519_s1, 4  ;;  %s365_s14 = int_to_ptr.hbm [resolvable:$true] %s364_s14 }
   0xa   :  { %v36_v3 = vshrl.u32 %v35_v2, 23  ;;  %v39_v7 = vand.u32 8388607, %v32_v4  ;;  %vm33_vm13 = vcmp.le.f32.partialorder %v32_v4, 0.7853982 }
   0xc   :  { %v374_v5 = vadd.s32 4294967169, %v36_v3  ;;  %v40_v10 = vor.u32 8388608, %v39_v7  ;;  %v450_v3 = vmov 0  }
   0xe   :  { %v42_v6 = vadd.s32 1, %v374_v5  ;;  %v477_v29 = vshll.u32 %v40_v10, 8 }
  0x10   :  { %vm43_vm0 = vcmp.gt.s32.totalorder %v42_v6, 0  ;;  %v81_v41 = vand.u32 65535, %v477_v29  ;;  %v82_v42 = vshrl.u32 %v477_v29, 16 }
  0x11   :  { %v44_v8 = vsel %vm43_vm0, %v42_v6, 0 }
  0x12   :  { %v46_v9 = vand.u32 31, %v44_v8  ;;  %v474_v11 = vshrl.u32 %v44_v8, 5 }
  0x14   :  { %v47_v12 = vsub.s32 32, %v46_v9  ;;  %v49_v14 = vshll.u32 %v444_v13, %v46_v9  ;;  %v52_v16 = vshll.u32 %v445_v15, %v46_v9  ;;  %v55_v18 = vshll.u32 %v446_v17, %v46_v9 }
  0x15   :  { %v58_v20 = vshll.u32 %v447_v19, %v46_v9  ;;  %v61_v22 = vshll.u32 %v448_v21, %v46_v9  ;;  %vm64_vm1 = vcmp.lt.s32.totalorder %v474_v11, 1  ;;  %vm67_vm2 = vcmp.lt.s32.totalorder %v474_v11, 4 }
  0x16   :  { %v50_v23 = vshrl.u32 %v445_v15, %v47_v12  ;;  %v53_v24 = vshrl.u32 %v446_v17, %v47_v12  ;;  %v56_v25 = vshrl.u32 %v447_v19, %v47_v12  ;;  %v59_v26 = vshrl.u32 %v448_v21, %v47_v12 }
  0x17   :  { %v62_v28 = vshrl.u32 %v449_v27, %v47_v12  ;;  %vm66_vm3 = vcmp.lt.s32.totalorder %v474_v11, 3  ;;  %vm65_vm4 = vcmp.lt.s32.totalorder %v474_v11, 2  ;;  %v48_v49 = vshrl.u32 %v444_v13, %v47_v12 }
  0x18   :  { %v51_v30 = vor.u32 %v50_v23, %v49_v14  ;;  %v54_v31 = vor.u32 %v53_v24, %v52_v16  ;;  %v57_v32 = vor.u32 %v56_v25, %v55_v18  ;;  %v60_v33 = vor.u32 %v59_v26, %v58_v20 }
  0x19   :  { %v63_v34 = vor.u32 %v62_v28, %v61_v22 }
  0x1a   :  { %v72_v35 = vsel %vm64_vm1, %v51_v30, %v54_v31  ;;  %v76_v36 = vsel %vm64_vm1, %v54_v31, %v57_v32  ;;  %v73_v37 = vsel %vm67_vm2, %v60_v33, 920167782  ;;  %v68_v62 = vsel %vm64_vm1, %v48_v49, %v51_v30 }
  0x1b   :  { %v77_v38 = vsel %vm67_vm2, %v63_v34, 1326507024  ;;  %v74_v39 = vsel %vm66_vm3, %v57_v32, %v73_v37  ;;  %v69_v2 = vsel %vm67_vm2, %v57_v32, 2102212464 }
  0x1c   :  { %v78_v40 = vsel %vm66_vm3, %v60_v33, %v77_v38  ;;  %v75_v43 = vsel %vm65_vm4, %v72_v35, %v74_v39  ;;  %v70_v14 = vsel %vm66_vm3, %v54_v31, %v69_v2 }
  0x1d   :  { %v79_v44 = vsel %vm65_vm4, %v76_v36, %v78_v40  ;;  %v105_v47 = vand.u32 65535, %v75_v43  ;;  %v106_v48 = vshrl.u32 %v75_v43, 16  ;;  %v71_v22 = vsel %vm65_vm4, %v68_v62, %v70_v14 }
  0x1e   :  { %v83_v45 = vand.u32 65535, %v79_v44  ;;  %v84_v46 = vshrl.u32 %v79_v44, 16  ;;  %v125_v26 = vmul.u32 %v477_v29, %v71_v22  ;;  %vm175_vm4 = vweird.f32 %v468_v1 }
  0x1f   :  { %v107_v53 = vmul.u32 %v105_v47, %v81_v41  ;;  %v108_v54 = vmul.u32 %v106_v48, %v81_v41  ;;  %v109_v55 = vmul.u32 %v105_v47, %v82_v42  ;;  %v110_v59 = vmul.u32 %v106_v48, %v82_v42 }
  0x20   :  { %v85_v50 = vmul.u32 %v83_v45, %v81_v41  ;;  %v86_v51 = vmul.u32 %v84_v46, %v81_v41  ;;  %v87_v52 = vmul.u32 %v83_v45, %v82_v42  ;;  %v88_v56 = vmul.u32 %v84_v46, %v82_v42 }
  0x21   :  { %v111_v60 = vshll.u32 %v108_v54, 16  ;;  %v113_v61 = vshll.u32 %v109_v55, 16  ;;  %v112_v12 = vshrl.u32 %v108_v54, 16  ;;  %v114_v18 = vshrl.u32 %v109_v55, 16 }
  0x22   :  { %v89_v57 = vshll.u32 %v86_v51, 16  ;;  %v91_v58 = vshll.u32 %v87_v52, 16  ;;  %v90_v7 = vshrl.u32 %v86_v51, 16  ;;  %v92_v15 = vshrl.u32 %v87_v52, 16 }
  0x23   :  { %vm115_vm6 = vc.u32 %v107_v53, %v111_v60  ;;  %v117_v6 = vadd.s32 %v111_v60, %v107_v53 }
  0x24   :  { %vm93_vm5 = vc.u32 %v85_v50, %v89_v57  ;;  %v95_v63 = vadd.s32 %v89_v57, %v85_v50  ;;  %v116_v9 = vsel %vm115_vm6, 1, %v450_v3  ;;  %vm346_vm6 = vcmask 1042432  }
  0x25   :  { %v94_v5 = vsel %vm93_vm5, 1, %v450_v3  ;;  %v118_v13 = vadd.s32 %v116_v9, %v110_v59  ;;  %vm119_vm8 = vc.u32 %v117_v6, %v113_v61  ;;  %v121_v21 = vadd.s32 %v117_v6, %v113_v61  ;;  %v390_v6 = vpop.eup %389 }
  0x26   :  { %v96_v8 = vadd.s32 %v94_v5, %v88_v56  ;;  %vm97_vm7 = vc.u32 %v95_v63, %v91_v58  ;;  %v120_v17 = vsel %vm119_vm8, 1, %v450_v3  ;;  %vm344_vm5 = vcmask 1041408  }
  0x27   :  { %v98_v10 = vsel %vm97_vm7, 1, %v450_v3  ;;  %v122_v19 = vadd.s32 %v120_v17, %v118_v13  ;;  %v28_v22 = vmul.f32 0.15, %v390_v6  ;;  %vm348_vm7 = vcmask 1043456  }
  0x28   :  { %v100_v16 = vadd.s32 %v98_v10, %v96_v8  ;;  %vm350_vm8 = vcmask 1044480  }
  0x29   :  { %v123_v23 = vadd.s32 %v122_v19, %v112_v12  ;;  %v25_v12 = vmul.f32 0.05, %v390_v6  ;;  %v27_v19 = vmul.f32 0.1, %v390_v6 }
  0x2a   :  { %v101_v20 = vadd.s32 %v100_v16, %v90_v7 }
  0x2b   :  { %v124_v25 = vadd.s32 %v123_v23, %v114_v18  ;;  %v26_v17 = vadd.f32 1.0, %v25_v12  ;;  %v29_v18 = vmul.f32 0.0, %v390_v6 }
  0x2c   :  { %v102_v24 = vadd.s32 %v101_v20, %v92_v15 }
  0x2d   :  { %v128_v27 = vadd.s32 1, %v124_v25 }
  0x2e   :  { %vm127_vm9 = vc.u32 %v102_v24, %v121_v21  ;;  %v126_v11 = vadd.s32 %v121_v21, %v102_v24 }
  0x2f   :  { %v129_v28 = vsel %vm127_vm9, %v128_v27, %v124_v25  ;;  %v30_v27 = vadd.f32 1.0, %v29_v18  ;;  %vm352_vm9 = vcmask 1045504  }
  0x30   :  { %v130_v30 = vadd.s32 %v129_v28, %v125_v26 }
  0x32   :  { %v131_v31 = vadd.s32 536870912, %v130_v30 }
  0x34   :  { %v132_v32 = vshrl.u32 %v131_v31, 30 }
  0x36   :  { %v133_v33 = vshll.u32 %v132_v32, 30  ;;  %v156_v50 = vsub.s32 4, %v132_v32 }
  0x38   :  { %v134_v34 = vsub.s32 %v130_v30, %v133_v33  ;;  %v157_v53 = vsel %vm34_vm12, %v156_v50, %v132_v32 }
  0x39   :  { %v159_v56 = vsel %vm33_vm13, 0, %v157_v53 }
  0x3a   :  { %vm135_vm10 = vcmp.lt.s32.totalorder %v134_v34, 0  ;;  %v136_v35 = vsub.s32 0, %v134_v34  ;;  %v330_v61 = vadd.s32 3, %v159_v56  ;;  %v176_v5 = vand.u32 3, %v159_v56 }
  0x3c   :  { %v137_v36 = vsel %vm135_vm10, %v136_v35, %v134_v34  ;;  %v331_v4 = vand.u32 3, %v330_v61  ;;  %vm181_vm14 = vcmp.eq.s32.totalorder %v176_v5, 2  ;;  %vm177_vm0 = vcmp.lt.s32.totalorder %v176_v5, 2 }
  0x3d   :  { %v138_v37 = vclz %v137_v36  ;;  %vm178_vm1 = vcmp.eq.s32.totalorder %v176_v5, 0  ;;  %vm354_vm10 = vcmask 1046528  }
  0x3e   :  { %vm336_vm15 = vcmp.eq.s32.totalorder %v331_v4, 2  ;;  %vm333_vm2 = vcmp.eq.s32.totalorder %v331_v4, 0  ;;  %vm332_vm3 = vcmp.lt.s32.totalorder %v331_v4, 2 }
  0x3f   :  { %v375_v38 = vadd.s32 4294967294, %v138_v37 }
  0x41   :  { %vm376_vm11 = vcmp.lt.s32.totalorder %v375_v38, 0 }
  0x42   :  { %v141_v39 = vsel %vm376_vm11, 0, %v375_v38 }
  0x43   :  { %v142_v40 = vsub.s32 32, %v141_v39  ;;  %v143_v41 = vshll.u32 %v134_v34, %v141_v39  ;;  %v146_v42 = vsub.s32 4294967266, %v141_v39 }
  0x45   :  { %v144_v29 = vshrl.u32 %v126_v11, %v142_v40  ;;  %v147_v43 = vadd.s32 127, %v146_v42 }
  0x47   :  { %v145_v44 = vor.u32 %v144_v29, %v143_v41  ;;  %v148_v45 = vshll.u32 %v147_v43, 23 }
  0x49   :  { %v149_v46 = vor.u32 4788187, %v148_v45  ;;  %v152_v47 = vcvt.s32.f32 %v145_v44 }
  0x4b   :  { %v150_v48 = vand.u32 2147483647, %v149_v46 }
  0x4d   :  { %v153_v49 = vmul.f32 %v152_v47, %v150_v48 }
  0x4f   :  { %v154_v51 = vxor.u32 2147483648, %v153_v49 }
  0x51   :  { %v155_v52 = vsel %vm34_vm12, %v154_v51, %v153_v49 }
  0x52   :  { %v158_v54 = vsel %vm33_vm13, %v468_v1, %v155_v52 }
  0x53   :  { %v160_v55 = vmul.f32 %v158_v54, %v158_v54 }
  0x55   :  { %v161_v57 = vmul.f32 -0.001358992, %v160_v55  ;;  %v168_v58 = vmul.f32 -0.00019511016, %v160_v55 }
  0x57   :  { %v162_v59 = vadd.f32 0.041655596, %v161_v57  ;;  %v169_v60 = vadd.f32 0.008332121, %v168_v58 }
  0x59   :  { %v163_v62 = vmul.f32 %v162_v59, %v160_v55  ;;  %v170_v63 = vmul.f32 %v169_v60, %v160_v55 }
  0x5b   :  { %v164_v2 = vadd.f32 -0.4999988, %v163_v62  ;;  %v171_v3 = vadd.f32 -0.16666654, %v170_v63 }
  0x5d   :  { %v165_v7 = vmul.f32 %v164_v2, %v160_v55  ;;  %v172_v8 = vmul.f32 %v171_v3, %v160_v55 }
  0x5f   :  { %v166_v9 = vadd.f32 1.0, %v165_v7  ;;  %v173_v10 = vadd.f32 1.0, %v172_v8 }
  0x61   :  { %v174_v13 = vmul.f32 %v173_v10, %v158_v54  ;;  %v182_v14 = vxor.u32 2147483648, %v166_v9 }
  0x63   :  { %v179_v0 = vxor.u32 2147483648, %v174_v13  ;;  %v183_v15 = vsel %vm181_vm14, %v182_v14, %v174_v13  ;;  %v338_v16 = vsel %vm336_vm15, %v182_v14, %v174_v13 }
  0x65   :  { %v180_v20 = vsel %vm178_vm1, %v166_v9, %v179_v0  ;;  %v335_v21 = vsel %vm333_vm2, %v166_v9, %v179_v0 }
  0x66   :  { %v184_v23 = vsel %vm177_vm0, %v180_v20, %v183_v15  ;;  %v339_v24 = vsel %vm332_vm3, %v335_v21, %v338_v16 }
  0x67   :  { %v185_v25 = vsel %vm175_vm4, nan, %v184_v23  ;;  %v340_v26 = vsel %vm175_vm4, nan, %v339_v24 }
  0x68   :  { %v345_v28 = vsel %vm344_vm5, %v26_v17, %v185_v25  ;;  %v342_v30 = vrot.slane %v340_v26, 3 }
  0x69   :  { %v347_v31 = vsel %vm346_vm6, %v345_v28, %v27_v19 }
  0x6a   :  { %v349_v1 = vsel %vm348_vm7, %v347_v31, %v28_v22 }
  0x6b   :  { %v351_v32 = vsel %vm350_vm8, %v349_v1, %v28_v22 }
  0x6c   :  { %v353_v33 = vsel %vm352_vm9, %v351_v32, %v30_v27 }
  0x6d   :  { %v355_v34 = vsel %vm354_vm10, %v353_v33, %v342_v30 }
  0x6e   :  { %356 = vst [vmem:[#allocation5] sm:$0xff] %v355_v34 }
  0x6f   :  { %367 = dma.vmem_to_hbm [thread:$0]  %s363_s11, 128, %s365_s14, [#allocation4]  }
  0x70   :  { %441 = dma.done.wait [#allocation4], 128  }
  0x71   :  { %442 = vsyncadd [#allocation4], 4294967168 }
  0x72   :  { %372 = vsyncpa [#allocation3], 1 }
  0x73   :  { %373 = vsyncpa [#allocation4], 1 }

</bundles_post_ra>
